<compile_context>
chip_gen: v5e
topology: v5e:2x2
jax: 0.10.0
libtpu: 0.0.40
codegen_flags: <defaults>
</compile_context>

<pallas_src>
import jax
import jax.numpy as jnp
from jax import lax
from jax.experimental import pallas as pl
from jax.experimental.pallas import tpu as pltpu


def make_convblock_kernel(C, W, TH, NB, HHB, use_halo):
    """Build the fused depthwise3x3 + pointwise1x1 + BN + ReLU band kernel."""
    BAND = TH * W  # flattened lane width of one row band

    def compute(center, left, right, wdw_ref, wpw_ref, b_ref, o_ref):
        f32 = jnp.float32
        # Band with 1-row halo on each side plus one zero column per side so
        # that every 3x3 tap is a *static* lane-offset slice.
        zcol = jnp.zeros((C, 1), f32)
        xb = jnp.concatenate([zcol, left, center, right, zcol], axis=1)
        # (C, BAND + 2W + 2); xb[:, q] holds flat column (band_start - W - 1 + q)

        # Left/right image-border masks (taps that would cross a row seam).
        wcol = lax.broadcasted_iota(jnp.int32, (1, W), 1)
        not_first = (wcol > 0).astype(f32)          # w != 0
        not_last = (wcol < W - 1).astype(f32)       # w != W-1
        mask_l = jnp.concatenate([not_first] * TH, axis=1)   # (1, BAND)
        mask_r = jnp.concatenate([not_last] * TH, axis=1)    # (1, BAND)

        # Depthwise 3x3: 9 static shifted multiply-accumulates (VPU).
        acc = jnp.zeros((C, BAND), f32)
        for dj in range(3):                 # W offset  (dj - 1)
            part = jnp.zeros((C, BAND), f32)
            for di in range(3):             # H offset  (di - 1)
                off = di * W + dj
                part = part + xb[:, off:off + BAND] * wdw_ref[di, dj]  # (C,1) bcast
            if dj == 0:
                part = part * mask_l
            elif dj == 2:
                part = part * mask_r
            acc = acc + part

        # Pointwise 1x1 conv with BN + both biases folded in (MXU matmul).
        y = jnp.dot(wpw_ref[...], acc, preferred_element_type=f32)  # (C, BAND)
        y = jnp.maximum(y + b_ref[...], 0.0)                        # bias + ReLU
        o_ref[0, :, :] = y.astype(o_ref.dtype)

    if use_halo:
        def kernel(xc_ref, xtop_ref, xbot_ref, wdw_ref, wpw_ref, b_ref, o_ref):
            j = pl.program_id(1)
            f32 = jnp.float32
            center = xc_ref[0].astype(f32)                               # (C, BAND)
            # halo row above the band = last W cols of the preceding block
            left = xtop_ref[0][:, HHB - W:].astype(f32) * (j > 0).astype(f32)
            # halo row below the band = first W cols of the following block
            right = xbot_ref[0][:, :W].astype(f32) * (j < NB - 1).astype(f32)
            compute(center, left, right, wdw_ref, wpw_ref, b_ref, o_ref)
    else:
        def kernel(xc_ref, wdw_ref, wpw_ref, b_ref, o_ref):
            f32 = jnp.float32
            center = xc_ref[0].astype(f32)
            zeros = jnp.zeros((C, W), f32)
            compute(center, zeros, zeros, wdw_ref, wpw_ref, b_ref, o_ref)

    return kernel


def conv_block_forward(x_nchw, params):
    """ConvBlock forward. x_nchw: (N, C, H, W) float32 -> (N, C, H, W)."""
    N, C, H, W = x_nchw.shape
    HW = H * W
    eps = 4e-5

    # ---- fold eval-mode BatchNorm + both conv biases into the pointwise ----
    # TODO(synk): PyTorch's default train-mode BN uses batch statistics; this
    # implements eval-mode BN with running stats (mean=0, var=1 at init).
    inv_std = 1.0 / jnp.sqrt(params['bn_running_var'] + eps)
    scale = params['bn_gamma'] * inv_std                               # (C,)
    shift = params['bn_beta'] - params['bn_running_mean'] * scale      # (C,)
    wpw = params['pw_weight'][:, :, 0, 0]                              # (Cout, Cin)
    wpw_fused = wpw * scale[:, None]                                   # (Cout, Cin)
    b_fused = scale * (wpw @ params['dw_bias'] + params['pw_bias']) + shift
    b_fused = b_fused.reshape(C, 1)
    # depthwise weight (C,1,3,3) -> (3,3,C,1) so wdw[i, j] broadcasts over lanes
    wdw = jnp.transpose(params['dw_weight'][:, 0, :, :], (1, 2, 0)).reshape(3, 3, C, 1)

    # ---- row-band tiling: TH divides H, band = TH*W lanes (multiple of 128,
    #      capped at 1024) so stores are lane-dense and VMEM stays bounded ----
    TH = None
    if W <= 128 or W % 128 == 0:
        for d in range(1, H):
            if H % d == 0 and (d * W) % 128 == 0 and d * W <= 1024:
                TH = d                      # keep the largest qualifying band
    use_halo = TH is not None
    if TH is None:
        TH = H                              # fallback: whole image per grid step
    NB = H // TH
    BAND = TH * W
    HHB = W if (W % 128 == 0) else 128      # width of the aligned halo side-blocks

    x2 = x_nchw.reshape(N, C, HW)           # free reshape; NO transpose

    in_specs = [pl.BlockSpec((1, C, BAND), lambda n, j: (n, 0, j))]
    inputs = [x2]
    if use_halo:
        nhb = BAND // HHB                   # halo-blocks per band
        last_hb = HW // HHB - 1
        in_specs += [
            # block whose tail W columns are the row just above the band
            pl.BlockSpec((1, C, HHB),
                         lambda n, j: (n, 0, jnp.maximum(j * nhb - 1, 0))),
            # block whose head W columns are the row just below the band
            pl.BlockSpec((1, C, HHB),
                         lambda n, j: (n, 0, jnp.minimum((j + 1) * nhb, last_hb))),
        ]
        inputs += [x2, x2]
    in_specs += [
        pl.BlockSpec((3, 3, C, 1), lambda n, j: (0, 0, 0, 0)),
        pl.BlockSpec((C, C), lambda n, j: (0, 0)),
        pl.BlockSpec((C, 1), lambda n, j: (0, 0)),
    ]
    inputs += [wdw, wpw_fused, b_fused]

    kernel = make_convblock_kernel(C, W, TH, NB, HHB, use_halo)

    flops = N * HW * C * (2 * 9 + 2 * C)
    bytes_accessed = 4 * (2 * N * C * HW + C * C + 9 * C + C)

    out2 = pl.pallas_call(
        kernel,
        out_shape=jax.ShapeDtypeStruct((N, C, HW), x_nchw.dtype),
        grid_spec=pltpu.PrefetchScalarGridSpec(
            num_scalar_prefetch=0,
            grid=(N, NB),
            in_specs=in_specs,
            out_specs=pl.BlockSpec((1, C, BAND), lambda n, j: (n, 0, j)),
        ),
        compiler_params=pltpu.CompilerParams(
            dimension_semantics=("parallel", "parallel")),
        cost_estimate=pl.CostEstimate(flops=flops, transcendentals=0,
                                      bytes_accessed=bytes_accessed),
    )(*inputs)

    return out2.reshape(N, C, H, W)         # free reshape back to NCHW


def init_params(key, C):
    k = jax.random.split(key, 4)
    return {
        'dw_weight': jax.random.normal(k[0], (C, 1, 3, 3), jnp.float32) * 0.1,
        'dw_bias':   jax.random.normal(k[1], (C,), jnp.float32) * 0.1,
        'pw_weight': jax.random.normal(k[2], (C, C, 1, 1), jnp.float32) * 0.1,
        'pw_bias':   jax.random.normal(k[3], (C,), jnp.float32) * 0.1,
        'bn_gamma':        jnp.ones((C,), jnp.float32),
        'bn_beta':         jnp.zeros((C,), jnp.float32),
        'bn_running_mean': jnp.zeros((C,), jnp.float32),
        'bn_running_var':  jnp.ones((C,), jnp.float32),
    }


def reference_forward(x_nchw, params):
    """Pure-JAX reference (same eval-mode BN semantics) for a correctness check."""
    C = x_nchw.shape[1]
    dw = lax.conv_general_dilated(
        x_nchw, params['dw_weight'], window_strides=(1, 1), padding=((1, 1), (1, 1)),
        dimension_numbers=('NCHW', 'OIHW', 'NCHW'), feature_group_count=C)
    dw = dw + params['dw_bias'][None, :, None, None]
    pw = lax.conv_general_dilated(
        dw, params['pw_weight'], window_strides=(1, 1), padding=((0, 0), (0, 0)),
        dimension_numbers=('NCHW', 'OIHW', 'NCHW'))
    pw = pw + params['pw_bias'][None, :, None, None]
    eps = 4e-5
    inv_std = 1.0 / jnp.sqrt(params['bn_running_var'] + eps)
    y = (pw - params['bn_running_mean'][None, :, None, None]) \
        * (params['bn_gamma'] * inv_std)[None, :, None, None] \
        + params['bn_beta'][None, :, None, None]
    return jnp.maximum(y, 0.0)


if __name__ == "__main__":
    key = jax.random.PRNGKey(0)
    kx, kp = jax.random.split(key)

    N, C, H, W = 2, 4, 16, 16
    x = jax.random.normal(kx, (N, C, H, W), jnp.float32)
    params = init_params(kp, C)

    out = jax.block_until_ready(conv_block_forward(x, params))

    ref = reference_forward(x, params)
    assert out.shape == (N, C, H, W)
    assert jnp.allclose(out, ref, atol=5e-4, rtol=5e-4), "mismatch vs reference"

    print("KERNEL_OK")
</pallas_src>

<mosaic_0001>
module attributes {stable_mosaic.version = 11 : i64} {
  func.func @kernel(%arg0: i32, %arg1: i32, %arg2: memref<1x4x128xf32, #tpu.memory_space<vmem>>, %arg3: memref<1x4x128xf32, #tpu.memory_space<vmem>>, %arg4: memref<1x4x128xf32, #tpu.memory_space<vmem>>, %arg5: memref<3x3x4x1xf32, #tpu.memory_space<vmem>>, %arg6: memref<4x4xf32, #tpu.memory_space<vmem>>, %arg7: memref<4x1xf32, #tpu.memory_space<vmem>>, %arg8: memref<1x4x128xf32, #tpu.memory_space<vmem>>) attributes {dimension_semantics = [#tpu.dimension_semantics<parallel>, #tpu.dimension_semantics<parallel>], iteration_bounds = array<i64: 2, 2>, scalar_prefetch = 0 : i64, scratch_operands = 0 : i64, tpu.core_type = #tpu.core_type<tc>, window_params = [{transform_indices = @transform_0, window_bounds = array<i64: 1, 4, 128>}, {transform_indices = @transform_1, window_bounds = array<i64: 1, 4, 128>}, {transform_indices = @transform_2, window_bounds = array<i64: 1, 4, 128>}, {pipeline_mode = #tpu.pipeline_mode<synchronous>, transform_indices = @transform_3, window_bounds = array<i64: 3, 3, 4, 1>}, {pipeline_mode = #tpu.pipeline_mode<synchronous>, transform_indices = @transform_4, window_bounds = array<i64: 4, 4>}, {pipeline_mode = #tpu.pipeline_mode<synchronous>, transform_indices = @transform_5, window_bounds = array<i64: 4, 1>}, {transform_indices = @transform_6, window_bounds = array<i64: 1, 4, 128>}]} {
    %c0 = arith.constant 0 : index
    %c0_0 = arith.constant 0 : index
    %c0_1 = arith.constant 0 : index
    %0 = vector.load %arg2[%c0, %c0_0, %c0_1] : memref<1x4x128xf32, #tpu.memory_space<vmem>>, vector<1x4x128xf32>
    %1 = vector.shape_cast %0 : vector<1x4x128xf32> to vector<4x128xf32>
    %c0_2 = arith.constant 0 : index
    %c0_3 = arith.constant 0 : index
    %c0_4 = arith.constant 0 : index
    %2 = vector.load %arg3[%c0_2, %c0_3, %c0_4] : memref<1x4x128xf32, #tpu.memory_space<vmem>>, vector<1x4x128xf32>
    %3 = vector.shape_cast %2 : vector<1x4x128xf32> to vector<4x128xf32>
    %4 = vector.extract_strided_slice %3 {offsets = [0, 112], sizes = [4, 16], strides = [1, 1]} : vector<4x128xf32> to vector<4x16xf32>
    %c0_i32 = arith.constant 0 : i32
    %5 = arith.cmpi sgt, %arg1, %c0_i32 : i32
    %6 = arith.extui %5 : i1 to i32
    %7 = arith.sitofp %6 : i32 to f32
    %8 = vector.broadcast %7 : f32 to vector<4x16xf32>
    %9 = arith.mulf %4, %8 : vector<4x16xf32>
    %c0_5 = arith.constant 0 : index
    %c0_6 = arith.constant 0 : index
    %c0_7 = arith.constant 0 : index
    %10 = vector.load %arg4[%c0_5, %c0_6, %c0_7] : memref<1x4x128xf32, #tpu.memory_space<vmem>>, vector<1x4x128xf32>
    %11 = vector.shape_cast %10 : vector<1x4x128xf32> to vector<4x128xf32>
    %12 = vector.extract_strided_slice %11 {offsets = [0, 0], sizes = [4, 16], strides = [1, 1]} : vector<4x128xf32> to vector<4x16xf32>
    %c1_i32 = arith.constant 1 : i32
    %13 = arith.cmpi slt, %arg1, %c1_i32 : i32
    %14 = arith.extui %13 : i1 to i32
    %15 = arith.sitofp %14 : i32 to f32
    %16 = vector.broadcast %15 : f32 to vector<4x16xf32>
    %17 = arith.mulf %12, %16 : vector<4x16xf32>
    %cst = arith.constant 0.000000e+00 : f32
    %18 = vector.broadcast %cst : f32 to vector<4x1xf32>
    %19 = tpu.concatenate %18, %9, %1, %17, %18 in 1 : vector<4x1xf32>, vector<4x16xf32>, vector<4x128xf32>, vector<4x16xf32>, vector<4x1xf32> -> vector<4x162xf32>
    %20 = tpu.iota {dimensions = array<i32: 1>} : vector<1x16xi32>
    %c0_i32_8 = arith.constant 0 : i32
    %21 = vector.broadcast %c0_i32_8 : i32 to vector<1x16xi32>
    %22 = arith.cmpi sgt, %20, %21 : vector<1x16xi32>
    %23 = arith.extui %22 : vector<1x16xi1> to vector<1x16xi32>
    %24 = arith.sitofp %23 : vector<1x16xi32> to vector<1x16xf32>
    %c15_i32 = arith.constant 15 : i32
    %25 = vector.broadcast %c15_i32 : i32 to vector<1x16xi32>
    %26 = arith.cmpi slt, %20, %25 : vector<1x16xi32>
    %27 = arith.extui %26 : vector<1x16xi1> to vector<1x16xi32>
    %28 = arith.sitofp %27 : vector<1x16xi32> to vector<1x16xf32>
    %29 = tpu.concatenate %24, %24, %24, %24, %24, %24, %24, %24 in 1 : vector<1x16xf32>, vector<1x16xf32>, vector<1x16xf32>, vector<1x16xf32>, vector<1x16xf32>, vector<1x16xf32>, vector<1x16xf32>, vector<1x16xf32> -> vector<1x128xf32>
    %30 = tpu.concatenate %28, %28, %28, %28, %28, %28, %28, %28 in 1 : vector<1x16xf32>, vector<1x16xf32>, vector<1x16xf32>, vector<1x16xf32>, vector<1x16xf32>, vector<1x16xf32>, vector<1x16xf32>, vector<1x16xf32> -> vector<1x128xf32>
    %cst_9 = arith.constant 0.000000e+00 : f32
    %31 = vector.broadcast %cst_9 : f32 to vector<4x128xf32>
    %cst_10 = arith.constant 0.000000e+00 : f32
    %32 = vector.broadcast %cst_10 : f32 to vector<4x128xf32>
    %33 = vector.extract_strided_slice %19 {offsets = [0, 0], sizes = [4, 128], strides = [1, 1]} : vector<4x162xf32> to vector<4x128xf32>
    %c0_11 = arith.constant 0 : index
    %c0_12 = arith.constant 0 : index
    %c0_13 = arith.constant 0 : index
    %c0_14 = arith.constant 0 : index
    %34 = vector.load %arg5[%c0_11, %c0_12, %c0_13, %c0_14] : memref<3x3x4x1xf32, #tpu.memory_space<vmem>>, vector<1x1x4x1xf32>
    %35 = vector.shape_cast %34 : vector<1x1x4x1xf32> to vector<4x1xf32>
    %36 = vector.broadcast %35 : vector<4x1xf32> to vector<4x128xf32>
    %37 = arith.mulf %33, %36 : vector<4x128xf32>
    %38 = arith.addf %32, %37 : vector<4x128xf32>
    %39 = vector.extract_strided_slice %19 {offsets = [0, 16], sizes = [4, 128], strides = [1, 1]} : vector<4x162xf32> to vector<4x128xf32>
    %c1 = arith.constant 1 : index
    %c0_15 = arith.constant 0 : index
    %c0_16 = arith.constant 0 : index
    %c0_17 = arith.constant 0 : index
    %40 = vector.load %arg5[%c1, %c0_15, %c0_16, %c0_17] : memref<3x3x4x1xf32, #tpu.memory_space<vmem>>, vector<1x1x4x1xf32>
    %41 = vector.shape_cast %40 : vector<1x1x4x1xf32> to vector<4x1xf32>
    %42 = vector.broadcast %41 : vector<4x1xf32> to vector<4x128xf32>
    %43 = arith.mulf %39, %42 : vector<4x128xf32>
    %44 = arith.addf %38, %43 : vector<4x128xf32>
    %45 = vector.extract_strided_slice %19 {offsets = [0, 32], sizes = [4, 128], strides = [1, 1]} : vector<4x162xf32> to vector<4x128xf32>
    %c2 = arith.constant 2 : index
    %c0_18 = arith.constant 0 : index
    %c0_19 = arith.constant 0 : index
    %c0_20 = arith.constant 0 : index
    %46 = vector.load %arg5[%c2, %c0_18, %c0_19, %c0_20] : memref<3x3x4x1xf32, #tpu.memory_space<vmem>>, vector<1x1x4x1xf32>
    %47 = vector.shape_cast %46 : vector<1x1x4x1xf32> to vector<4x1xf32>
    %48 = vector.broadcast %47 : vector<4x1xf32> to vector<4x128xf32>
    %49 = arith.mulf %45, %48 : vector<4x128xf32>
    %50 = arith.addf %44, %49 : vector<4x128xf32>
    %51 = vector.broadcast %29 : vector<1x128xf32> to vector<4x128xf32>
    %52 = arith.mulf %50, %51 : vector<4x128xf32>
    %53 = arith.addf %31, %52 : vector<4x128xf32>
    %cst_21 = arith.constant 0.000000e+00 : f32
    %54 = vector.broadcast %cst_21 : f32 to vector<4x128xf32>
    %55 = vector.extract_strided_slice %19 {offsets = [0, 1], sizes = [4, 128], strides = [1, 1]} : vector<4x162xf32> to vector<4x128xf32>
    %c0_22 = arith.constant 0 : index
    %c1_23 = arith.constant 1 : index
    %c0_24 = arith.constant 0 : index
    %c0_25 = arith.constant 0 : index
    %56 = vector.load %arg5[%c0_22, %c1_23, %c0_24, %c0_25] : memref<3x3x4x1xf32, #tpu.memory_space<vmem>>, vector<1x1x4x1xf32>
    %57 = vector.shape_cast %56 : vector<1x1x4x1xf32> to vector<4x1xf32>
    %58 = vector.broadcast %57 : vector<4x1xf32> to vector<4x128xf32>
    %59 = arith.mulf %55, %58 : vector<4x128xf32>
    %60 = arith.addf %54, %59 : vector<4x128xf32>
    %61 = vector.extract_strided_slice %19 {offsets = [0, 17], sizes = [4, 128], strides = [1, 1]} : vector<4x162xf32> to vector<4x128xf32>
    %c1_26 = arith.constant 1 : index
    %c1_27 = arith.constant 1 : index
    %c0_28 = arith.constant 0 : index
    %c0_29 = arith.constant 0 : index
    %62 = vector.load %arg5[%c1_26, %c1_27, %c0_28, %c0_29] : memref<3x3x4x1xf32, #tpu.memory_space<vmem>>, vector<1x1x4x1xf32>
    %63 = vector.shape_cast %62 : vector<1x1x4x1xf32> to vector<4x1xf32>
    %64 = vector.broadcast %63 : vector<4x1xf32> to vector<4x128xf32>
    %65 = arith.mulf %61, %64 : vector<4x128xf32>
    %66 = arith.addf %60, %65 : vector<4x128xf32>
    %67 = vector.extract_strided_slice %19 {offsets = [0, 33], sizes = [4, 128], strides = [1, 1]} : vector<4x162xf32> to vector<4x128xf32>
    %c2_30 = arith.constant 2 : index
    %c1_31 = arith.constant 1 : index
    %c0_32 = arith.constant 0 : index
    %c0_33 = arith.constant 0 : index
    %68 = vector.load %arg5[%c2_30, %c1_31, %c0_32, %c0_33] : memref<3x3x4x1xf32, #tpu.memory_space<vmem>>, vector<1x1x4x1xf32>
    %69 = vector.shape_cast %68 : vector<1x1x4x1xf32> to vector<4x1xf32>
    %70 = vector.broadcast %69 : vector<4x1xf32> to vector<4x128xf32>
    %71 = arith.mulf %67, %70 : vector<4x128xf32>
    %72 = arith.addf %66, %71 : vector<4x128xf32>
    %73 = arith.addf %53, %72 : vector<4x128xf32>
    %cst_34 = arith.constant 0.000000e+00 : f32
    %74 = vector.broadcast %cst_34 : f32 to vector<4x128xf32>
    %75 = vector.extract_strided_slice %19 {offsets = [0, 2], sizes = [4, 128], strides = [1, 1]} : vector<4x162xf32> to vector<4x128xf32>
    %c0_35 = arith.constant 0 : index
    %c2_36 = arith.constant 2 : index
    %c0_37 = arith.constant 0 : index
    %c0_38 = arith.constant 0 : index
    %76 = vector.load %arg5[%c0_35, %c2_36, %c0_37, %c0_38] : memref<3x3x4x1xf32, #tpu.memory_space<vmem>>, vector<1x1x4x1xf32>
    %77 = vector.shape_cast %76 : vector<1x1x4x1xf32> to vector<4x1xf32>
    %78 = vector.broadcast %77 : vector<4x1xf32> to vector<4x128xf32>
    %79 = arith.mulf %75, %78 : vector<4x128xf32>
    %80 = arith.addf %74, %79 : vector<4x128xf32>
    %81 = vector.extract_strided_slice %19 {offsets = [0, 18], sizes = [4, 128], strides = [1, 1]} : vector<4x162xf32> to vector<4x128xf32>
    %c1_39 = arith.constant 1 : index
    %c2_40 = arith.constant 2 : index
    %c0_41 = arith.constant 0 : index
    %c0_42 = arith.constant 0 : index
    %82 = vector.load %arg5[%c1_39, %c2_40, %c0_41, %c0_42] : memref<3x3x4x1xf32, #tpu.memory_space<vmem>>, vector<1x1x4x1xf32>
    %83 = vector.shape_cast %82 : vector<1x1x4x1xf32> to vector<4x1xf32>
    %84 = vector.broadcast %83 : vector<4x1xf32> to vector<4x128xf32>
    %85 = arith.mulf %81, %84 : vector<4x128xf32>
    %86 = arith.addf %80, %85 : vector<4x128xf32>
    %87 = vector.extract_strided_slice %19 {offsets = [0, 34], sizes = [4, 128], strides = [1, 1]} : vector<4x162xf32> to vector<4x128xf32>
    %c2_43 = arith.constant 2 : index
    %c2_44 = arith.constant 2 : index
    %c0_45 = arith.constant 0 : index
    %c0_46 = arith.constant 0 : index
    %88 = vector.load %arg5[%c2_43, %c2_44, %c0_45, %c0_46] : memref<3x3x4x1xf32, #tpu.memory_space<vmem>>, vector<1x1x4x1xf32>
    %89 = vector.shape_cast %88 : vector<1x1x4x1xf32> to vector<4x1xf32>
    %90 = vector.broadcast %89 : vector<4x1xf32> to vector<4x128xf32>
    %91 = arith.mulf %87, %90 : vector<4x128xf32>
    %92 = arith.addf %86, %91 : vector<4x128xf32>
    %93 = vector.broadcast %30 : vector<1x128xf32> to vector<4x128xf32>
    %94 = arith.mulf %92, %93 : vector<4x128xf32>
    %95 = arith.addf %73, %94 : vector<4x128xf32>
    %c0_47 = arith.constant 0 : index
    %c0_48 = arith.constant 0 : index
    %96 = vector.load %arg6[%c0_47, %c0_48] : memref<4x4xf32, #tpu.memory_space<vmem>>, vector<4x4xf32>
    %cst_49 = arith.constant dense<0.000000e+00> : vector<4x128xf32>
    %97 = tpu.matmul %96, %95, %cst_49 {dimension_numbers = #tpu.dot_dimension_numbers<[1], [0], [0], [1], [0, 0, 1, 1], [], []>} : vector<4x4xf32>, vector<4x128xf32>, vector<4x128xf32> -> vector<4x128xf32>
    %c0_50 = arith.constant 0 : index
    %c0_51 = arith.constant 0 : index
    %98 = vector.load %arg7[%c0_50, %c0_51] : memref<4x1xf32, #tpu.memory_space<vmem>>, vector<4x1xf32>
    %99 = vector.broadcast %98 : vector<4x1xf32> to vector<4x128xf32>
    %100 = arith.addf %97, %99 : vector<4x128xf32>
    %cst_52 = arith.constant 0.000000e+00 : f32
    %101 = vector.broadcast %cst_52 : f32 to vector<4x128xf32>
    %102 = arith.maximumf %100, %101 : vector<4x128xf32>
    %c0_53 = arith.constant 0 : index
    %c0_54 = arith.constant 0 : index
    %c0_55 = arith.constant 0 : index
    %103 = vector.load %arg8[%c0_53, %c0_54, %c0_55] : memref<1x4x128xf32, #tpu.memory_space<vmem>>, vector<1x4x128xf32>
    %104 = vector.shape_cast %103 : vector<1x4x128xf32> to vector<4x128xf32>
    %105 = vector.shape_cast %102 : vector<4x128xf32> to vector<1x4x128xf32>
    tpu.vector_store %arg8[%c0_53, %c0_54, %c0_55], %105 {strides = array<i32>} : memref<1x4x128xf32, #tpu.memory_space<vmem>>, vector<1x4x128xf32>,
    return
  }
  func.func @transform_0(%arg0: i32, %arg1: i32) -> (i32, i32, i32) {
    %c0_i32 = arith.constant 0 : i32
    %c0_i32_0 = arith.constant 0 : i32
    return %arg0, %c0_i32, %arg1 : i32, i32, i32
  }
  func.func @transform_1(%arg0: i32, %arg1: i32) -> (i32, i32, i32) {
    %c1_i32 = arith.constant 1 : i32
    %0 = arith.muli %arg1, %c1_i32 : i32
    %c1_i32_0 = arith.constant 1 : i32
    %1 = arith.subi %0, %c1_i32_0 : i32
    %c0_i32 = arith.constant 0 : i32
    %2 = arith.maxsi %1, %c0_i32 : i32
    %c0_i32_1 = arith.constant 0 : i32
    %c0_i32_2 = arith.constant 0 : i32
    return %arg0, %c0_i32_1, %2 : i32, i32, i32
  }
  func.func @transform_2(%arg0: i32, %arg1: i32) -> (i32, i32, i32) {
    %c1_i32 = arith.constant 1 : i32
    %0 = arith.addi %arg1, %c1_i32 : i32
    %c1_i32_0 = arith.constant 1 : i32
    %1 = arith.muli %0, %c1_i32_0 : i32
    %c1_i32_1 = arith.constant 1 : i32
    %2 = arith.minsi %1, %c1_i32_1 : i32
    %c0_i32 = arith.constant 0 : i32
    %c0_i32_2 = arith.constant 0 : i32
    return %arg0, %c0_i32, %2 : i32, i32, i32
  }
  func.func @transform_3(%arg0: i32, %arg1: i32) -> (i32, i32, i32, i32) {
    %c0_i32 = arith.constant 0 : i32
    %c0_i32_0 = arith.constant 0 : i32
    %c0_i32_1 = arith.constant 0 : i32
    %c0_i32_2 = arith.constant 0 : i32
    %c0_i32_3 = arith.constant 0 : i32
    return %c0_i32, %c0_i32_0, %c0_i32_1, %c0_i32_2 : i32, i32, i32, i32
  }
  func.func @transform_4(%arg0: i32, %arg1: i32) -> (i32, i32) {
    %c0_i32 = arith.constant 0 : i32
    %c0_i32_0 = arith.constant 0 : i32
    %c0_i32_1 = arith.constant 0 : i32
    return %c0_i32, %c0_i32_0 : i32, i32
  }
  func.func @transform_5(%arg0: i32, %arg1: i32) -> (i32, i32) {
    %c0_i32 = arith.constant 0 : i32
    %c0_i32_0 = arith.constant 0 : i32
    %c0_i32_1 = arith.constant 0 : i32
    return %c0_i32, %c0_i32_0 : i32, i32
  }
  func.func @transform_6(%arg0: i32, %arg1: i32) -> (i32, i32, i32) {
    %c0_i32 = arith.constant 0 : i32
    %c0_i32_0 = arith.constant 0 : i32
    return %arg0, %c0_i32, %arg1 : i32, i32, i32
  }
}

</mosaic_0001>

<bundles_post_ra>
// kernel: tpu_custom_call.1
= control target key start
LH: loop header
LB: loop body
LE: loop exit
PB: predicated region body
PF: predicated region fallthrough
CT: control target
= control target key end

     0   :  { %s1371_s0 = inlined_call_operand.vmem [shape: f32[2,4,256], index: 0, kind: input, shape index: {}]   ;;  %s1372_s1 = inlined_call_operand.vmem [shape: f32[2,4,256], index: 1, kind: input, shape index: {}]   ;;  %s1373_s2 = inlined_call_operand.vmem [shape: f32[2,4,256], index: 2, kind: input, shape index: {}]   ;;  %s1374_s3 = inlined_call_operand.vmem [shape: f32[3,3,4,1], index: 3, kind: input, shape index: {}]   ;;  %s1375_s4 = inlined_call_operand.vmem [shape: f32[4,4], index: 4, kind: input, shape index: {}]   ;;  %s1376_s5 = inlined_call_operand.vmem [shape: f32[4,1], index: 5, kind: input, shape index: {}]   ;;  %s1377_s6 = inlined_call_operand.hbm [shape: f32[2,4,256], index: 6, kind: output, shape index: {}]  }
   0x1   :  { %1384 = sst [smem:[#allocation8_spill]] %s1371_s0 }
   0x2   :  { %11 = vsyncpa [#allocation3], 0 }
   0x3   :  { %13 = vsyncpa [#allocation3 + $0x1], 0  ;;  %s1102_s21 = smov 0   ;;  %s1104_s22 = smov 0  }
   0x4   :  { %s1106_s23 = smov 0   ;;  %s1108_s24 = smov 0  }
   0x5   :  { %s1110_s25 = smov 0   ;;  %s1112_s26 = smov 0  }
   0x6   :  { %s1114_s27 = smov 0   ;;  %s1116_s28 = smov 0  }
   0x7 LB: > { %1385 = sst [smem:[#allocation5_spill]] %s1048_s27  ;;  %s829_s29 = sadd.s32 4294967295, %s1052_s28   ;;  %s1052_s28 = sphi %s1116_s28, %s19_s28   ;;  %s1048_s27 = sphi %s1114_s27, %s1396_s27   ;;  %s1044_s26 = sphi %s1112_s26, %s1401_s26   ;;  %s1040_s25 = sphi %s1110_s25, %s1394_s25   ;;  %s1036_s24 = sphi %s1108_s24, %s1400_s24   ;;  %s1032_s23 = sphi %s1106_s23, %s1399_s23   ;;  %s1028_s22 = sphi %s1104_s22, %s1398_s22   ;;  %s1024_s21 = sphi %s1102_s21, %s1397_s21  }
   0x8   : > { %s830_s30 = sadd.s32 4294967294, %s1052_s28   ;;  %s28_s7 = sadd.s32 1, %s1044_s26 }
   0x9   : > { %p29_p0 = scmp.ge.s32.totalorder %s28_s7, 2  ;;  %s31_s8 = sadd.s32 1, %s1048_s27 }
   0xa   : > { %p209_p1 = scmp.ne.s32.totalorder %s1032_s23, %s1028_s22  ;;  %p210_p2 = scmp.eq.s32.totalorder %s829_s29, 3 }
   0xb   : > { %s1403_s7 = smov (%p29_p0, %s28_s7), 0  ;;  %s1405_s8 = smov (!%p29_p0, %s31_s8), %s1048_s27 }
   0xc   : > { %1386 = sst [smem:[#allocation6_spill]] %s1403_s7  ;;  %s195_s9 = ssub.s32 %s1044_s26, %s1403_s7 }
   0xd   : > { %p1153_p3 = por %p210_p2, %p209_p1  ;;  %p33_p4 = scmp.ge.s32.totalorder %s1405_s8, 2 }
   0xe   : > { %p215_p5 = scmp.ne.s32.totalorder %s1028_s22, %s1024_s21  ;;  %p216_p6 = scmp.eq.s32.totalorder %s830_s30, 3 }
   0xf   : > { %p835_p7 = scmp.ge.s32.totalorder %s1052_s28, 1  ;;  %s1407_s8 = smov (%p33_p4, %s1405_s8), 0 }
  0x10   : > { %1388 = sst [smem:[#allocation7_spill]] %s1407_s8  ;;  %p1162_p8 = por %p216_p6, %p215_p5 }
  0x11   : > { %p288_p9 = scmp.lt.s32.totalorder %s1052_s28, 5  ;;  %s194_s12 = ssub.s32 %s1048_s27, %s1407_s8 }
  0x12   : > { %s199_s13 = sadd.s32 1, %s1032_s23  ;;  %s196_s14 = sor.u32 %s195_s9, %s194_s12 }
  0x13   : > { %p289_p10 = pnand %p835_p7, %p288_p9  ;;  %p197_p11 = scmp.eq.s32.totalorder %s196_s14, 0 }
  0x14   : > { %p343_p12 = scmp.lt.s32.totalorder (!%p289_p10), %s1040_s25, 1  ;;  %p345_p13 = scmp.lt.s32.totalorder (!%p289_p10), %s1036_s24, 1 }
  0x15   : > { %s1171_s15 = scalar_select %p197_p11, %s1032_s23, %s199_s13  }
  0x16   : > { %292 = sbr.rel (%p289_p10) target bundleno = 559 (0x22f), region = 44  ;;  %s365_s19 = sadd.s32 (!%p289_p10), 1, %s1036_s24 }
  0x17   : > { %s1379_s20 = smov (!%p289_p10), 32   ;;  %s1381_s29 = smov (!%p289_p10), 16  }
  0x18   : > { %p366_p0 = scmp.lt.s32.totalorder (!%p289_p10), %s365_s19, 1  ;;  %s1390_s0 = sld [smem:[#allocation8_spill]] (!%p289_p10) }
  0x19   : > { %s1058_s8 = smov (!%p289_p10), 17   ;;  %p381_p2 = scmp.gt.s32.totalorder (!%p289_p10), %s1036_s24, 0 }
  0x1a   : > { %s1062_s12 = smov (!%p289_p10), 112  }
  0x1b   : > { %v411_v0 = vlaneseq  ;;  %v1054_v1 = vmov 0   ;;  %s344_s16 = scalar_select %p343_p12, %s1040_s25, 1  ;;  %v1055_v3 = vmov 0.0   ;;  %v860_v12 = vld [vmem:[%s1374_s3 + $0x14] sm:$0xf]  ;;  %vm404_vm1 = vcmask 7168  }
  0x1c   : > { %956 = vset.pattern.permute.xlu1 %v1054_v1  ;;  %955 = vset.pattern.permute.xlu0 %v1054_v1  ;;  %s346_s17 = scalar_select %p345_p13, %s1036_s24, 1  ;;  %v858_v13 = vld [vmem:[%s1374_s3 + $0x1c] sm:$0xf]  ;;  %v857_v14 = vld [vmem:[%s1374_s3 + $0x10] sm:$0xf]  ;;  %vm406_vm2 = vcmask 138240  }
  0x1d   : > { %v1175_v2 = vand.u32 127, %v411_v0  ;;  %957 = vset.pattern.permute.xlu2 %v1054_v1  ;;  %s1185_s18 = sshll.u32 %s344_s16, 1  ;;  %s839_s16 = sadd.s32 4294967295, %s1036_s24  ;;  %v861_v15 = vld [vmem:[%s1374_s3 + $0x20] sm:$0xf]  ;;  %vm441_vm3 = vcmask 130048  }
  0x1e   : > { %s348_s30 = sadd.s32 %s1185_s18, %s346_s17  ;;  %s1409_s19 = smov (!%p366_p0, %s365_s19), 1  ;;  %v856_v16 = vld [vmem:[%s1374_s3 + $0x4] sm:$0xf]  ;;  %v854_v17 = vld [vmem:[%s1374_s3 + $0xc] sm:$0xf]  ;;  %vm409_vm4 = vcmask 269312  }
  0x1f   : > { %vm416_vm0 = vcmp.lt.s32.totalorder %v1175_v2, 15  ;;  %s838_s9 = sshll.u32 %s348_s30, 2  ;;  %s1411_s19 = smov (!%p366_p0, %s1409_s19), 1  ;;  %v855_v18 = vld [vmem:[%s1374_s3 + $0x18] sm:$0xf]  ;;  %vm443_vm5 = vcmask 261120  }
  0x20   : > { %v1183_v4 = vsel %vm416_vm0, 1.0, %v1055_v3  ;;  %s350_s14 = scalar_lea.vmem %s1390_s0, %s838_s9  ;;  %p352_p1 = scmp.gt.s32.totalorder %s839_s16, 0  ;;  %v859_v19 = vld [vmem:[%s1374_s3 + $0x8] sm:$0xf]  ;;  %vm445_vm6 = vcmask 392192   ;;  %vm447_vm7 = vcmask 523264  }
  0x21   : > { %459 = vrot.lane.b32.xlu2 %v1183_v4, %s1379_s20  ;;  %456 = vrot.lane.b32.xlu1 %v1183_v4, %s1381_s29  ;;  %v379_v5 = vld [vmem:[%s350_s14] sm:$0xf]  ;;  %s388_s20 = scalar_select %p345_p13, 1, 0  ;;  %vm449_vm8 = vcmask 654336   ;;  %vm451_vm9 = vcmask 785408  }
  0x22   : > { %397 = vrot.lane.b32.xlu0 %v379_v5, %s1058_s8  ;;  %s373_s29 = sadd.s32 %s1185_s18, %s1411_s19  ;;  %s1383_s17 = smov 48   ;;  %vm453_vm10 = vcmask 916480   ;;  %vm413_vm11 = vcmp.gt.s32.totalorder %v1175_v2, 0  ;;  %v484_v55 = vld [vmem:[%s1374_s3] sm:$0xf]  ;;  %vm588_vm12 = vcmask 1039360  }
  0x23   : > { %s389_s7 = scvt.s32.f32 %s388_s20  ;;  %s851_s30 = sshll.u32 %s373_s29, 2  ;;  %v1275_v54 = vsel %vm413_vm11, 1.0, %v1055_v3  ;;  %vm656_vm13 = vcmask 1031168   ;;  %vm671_vm14 = vcmask 1043456   ;;  %vm667_vm15 = vcmask 31744  }
  0x24   : > { %p840_p4 = scmp.lt.s32.totalorder %s839_s16, 1  ;;  %s375_s13 = scalar_lea.vmem %s1373_s2, %s851_s30 }
  0x25   : > { %v390_v6 = vstv %s389_s7  ;;  %v386_v7 = vld [vmem:[%s375_s13] sm:$0xf]  ;;  %s1413_s16 = smov (!%p352_p1, %s839_s16), 0  ;;  %s1060_s29 = smov 64  }
  0x26   : > { %v391_v8 = vmul.f32 %v390_v6, %v386_v7  ;;  %s382_s14 = scalar_select %p381_p2, 1, 0 }
  0x27   : > { %s1415_s16 = smov (!%p840_p4, %s1413_s16), 1  ;;  %s1392_s13 = smov 32  }
  0x28   : > { %s383_s19 = scvt.s32.f32 %s382_s14  ;;  %s359_s20 = sadd.s32 %s1415_s16, %s1185_s18 }
  0x29   : > { %462 = vrot.lane.b32.xlu2 %v1183_v4, %s1383_s17  ;;  %401 = vrot.lane.b32.xlu1 %v391_v8, %s1058_s8  ;;  %s846_s0 = sshll.u32 %s359_s20, 2  ;;  %s1061_s17 = smov 80  }
  0x2a   : > { %v384_v9 = vstv %s383_s19  ;;  %s361_s7 = scalar_lea.vmem %s1372_s1, %s846_s0  ;;  %s1063_s14 = smov 96  }
  0x2b   : > { %v380_v10 = vld [vmem:[%s361_s7] sm:$0xf]  ;;  %s1064_s0 = smov 2   ;;  %s1393_s19 = smov 16  }
  0x2c   : > { %v385_v11 = vmul.f32 %v384_v9, %v380_v10  ;;  %s865_s18 = sshll.u32 %s1040_s25, 1  ;;  %s340_s16 = sand.u32 1, %s1028_s22  }
  0x2d   : > { %s708_s27 = sadd.s32 %s1036_s24, %s865_s18  ;;  %s698_s25 = scalar_lea.sflag [#allocation3], %s340_s16 }
  0x2e   : > { %393 = vrot.lane.b32.xlu0 %v385_v11, %s1058_s8  ;;  %s1391_s8 = smov 48   ;;  %s978_s9 = scalar_lea.hbm %s1377_s6, 16 }
  0x31   : > { %465 = vrot.lane.b32.xlu2 %v1183_v4, %s1060_s29  ;;  %607 = vperm.xlu1 %956, %v860_v12  }
  0x36   : > { %546 = vperm.xlu0 %955, %v857_v14  }
  0x39   : > { %566 = vperm.xlu2 %957, %v858_v13   ;;  %468 = vrot.lane.b32.xlu1 %v1183_v4, %s1061_s17 }
  0x3e   : > { %627 = vperm.xlu0 %955, %v861_v15  }
  0x41   : > { %474 = vrot.lane.b32.xlu2 %v1183_v4, %s1062_s12  ;;  %471 = vrot.lane.b32.xlu1 %v1183_v4, %s1063_s14 }
  0x46   : > { %496 = vperm.xlu0 %955, %v854_v17   ;;  %v661_v17 = vld [vmem:[%s1376_s5] sm:$0xf] }
  0x49   : > { %535 = vperm.xlu2 %957, %v856_v16   ;;  %514 = vperm.xlu1 %956, %v855_v18  }
  0x4e   : > { %596 = vperm.xlu0 %955, %v859_v19  }
  0x7b   : > { %v460_v20 = vpop.permute.xlu2 %459 }
  0x83   : > { %v463_v22 = vpop.permute.xlu2 %462 }
  0x8b   : > { %v466_v25 = vpop.permute.xlu2 %465 }
  0x93   : > { %v457_v21 = vpop.permute.xlu1 %456  ;;  %v567_v33 = vpop.permute.xlu2 %566 }
  0x94   : > { %v398_v23 = vpop.permute.xlu0 %397  ;;  %v477_v32 = vsel %vm441_vm3, %v1183_v4, %v457_v21 }
  0x95   : > { %v478_v39 = vsel %vm443_vm5, %v477_v32, %v460_v20 }
  0x96   : > { %v479_v41 = vsel %vm445_vm6, %v478_v39, %v463_v22 }
  0x97   : > { %v480_v42 = vsel %vm447_vm7, %v479_v41, %v466_v25 }
  0x9b   : > { %v402_v24 = vpop.permute.xlu1 %401  ;;  %v475_v47 = vpop.permute.xlu2 %474 }
  0x9c   : > { %v408_v31 = vsel %vm406_vm2, %v398_v23, %v402_v24 }
  0x9d   : > { %v1251_v34 = vsel %vm409_vm4, %v408_v31, 0.0 }
  0x9e   : > { %v570_v40 = vmul.f32 %v567_v33, %v1251_v34 }
  0xa0   : > { %v394_v26 = vpop.permute.xlu0 %393 }
  0xa1   : > { %v405_v27 = vsel %vm404_vm1, 0.0, %v394_v26 }
  0xa2   : > { %v1245_v29 = vsel %vm406_vm2, %v405_v27, %v398_v23 }
  0xa3   : > { %v608_v28 = vpop.permute.xlu1 %607  ;;  %v569_v45 = vmul.f32 %v567_v33, %v1245_v29  ;;  %v536_v62 = vpop.permute.xlu2 %535 }
  0xa4   : > { %v610_v30 = vmul.f32 %v608_v28, %v1245_v29  ;;  %v611_v43 = vmul.f32 %v608_v28, %v1251_v34  ;;  %v539_v2 = vmul.f32 %v536_v62, %v1251_v34  ;;  %v538_v3 = vmul.f32 %v536_v62, %v1245_v29  ;;  %v660_v62 = vld [vmem:[%s1375_s4] sm:$0xf] }
  0xa6   : > { %614 = vrot.lane.b32.xlu0 %v610_v30, %s1062_s12 }
  0xa8   : > { %v547_v35 = vpop.permute.xlu0 %546 }
  0xa9   : > { %v549_v36 = vmul.f32 %v547_v35, %v1245_v29  ;;  %v550_v37 = vmul.f32 %v547_v35, %v1251_v34 }
  0xab   : > { %v469_v38 = vpop.permute.xlu1 %468  ;;  %555 = vrot.lane.b32.xlu2 %v550_v37, %s1062_s12  ;;  %553 = vrot.lane.b32.xlu1 %v549_v36, %s1062_s12 }
  0xac   : > { %v481_v44 = vsel %vm449_vm8, %v480_v42, %v469_v38 }
  0xae   : > { %575 = vrot.lane.b32.xlu0 %v570_v40, %s1063_s14 }
  0xb0   : > { %v628_v51 = vpop.permute.xlu0 %627 }
  0xb1   : > { %v630_v52 = vmul.f32 %v628_v51, %v1245_v29  ;;  %v631_v53 = vmul.f32 %v628_v51, %v1251_v34 }
  0xb3   : > { %v472_v46 = vpop.permute.xlu1 %471  ;;  %573 = vrot.lane.b32.xlu2 %v569_v45, %s1063_s14  ;;  %616 = vrot.lane.b32.xlu1 %v611_v43, %s1062_s12 }
  0xb4   : > { %v482_v48 = vsel %vm451_vm9, %v481_v44, %v472_v46 }
  0xb5   : > { %v483_v49 = vsel %vm453_vm10, %v482_v48, %v475_v47 }
  0xb6   : > { %v643_v50 = vperm.slane %v483_v49, 0 }
  0xb8   : > { %645 = vrot.lane.b32.xlu0 %v643_v50, %s1064_s0  ;;  %v497_v56 = vpop.permute.xlu0 %496  ;;  %s836_s0 = sshll.u32 %s340_s16, 2 }
  0xb9   : > { %v500_v57 = vmul.f32 %v497_v56, %v1251_v34  ;;  %v499_v60 = vmul.f32 %v497_v56, %v1245_v29  ;;  %s342_s7 = scalar_lea.vmem [#allocation2], %s836_s0 }
  0xbb   : > { %636 = vrot.lane.b32.xlu2 %v631_v53, %s1063_s14  ;;  %634 = vrot.lane.b32.xlu1 %v630_v52, %s1063_s14  ;;  %v515_v58 = vpop.permute.xlu1 %514 }
  0xbc   : > { %v518_v59 = vmul.f32 %v515_v58, %v1251_v34  ;;  %v517_v61 = vmul.f32 %v515_v58, %v1245_v29 }
  0xc0   : > { %426 = vrot.lane.b32.xlu0 %v1275_v54, %s1391_s8  ;;  %v597_v63 = vpop.permute.xlu0 %596  ;;  %s866_s8 = sshll.u32 %s708_s27, 2 }
  0xc1   : > { %v600_v13 = vmul.f32 %v597_v63, %v1251_v34  ;;  %v599_v22 = vmul.f32 %v597_v63, %v1245_v29  ;;  %s710_s20 = scalar_lea.hbm %s1377_s6, %s866_s8 }
  0xc3   : > { %423 = vrot.lane.b32.xlu2 %v1275_v54, %s1392_s13  ;;  %420 = vrot.lane.b32.xlu1 %v1275_v54, %s1393_s19 }
  0xc8   : > { %432 = vrot.lane.b32.xlu0 %v1275_v54, %s1061_s17  ;;  %s714_s17 = sshll.u32 %s710_s20, 4  ;;  %s715_s17 = int_to_ptr.hbm [resolvable:$true] %s714_s17 }
  0xcb   : > { %487 = vperm.xlu2 %957, %v484_v55   ;;  %429 = vrot.lane.b32.xlu1 %v1275_v54, %s1060_s29  ;;  %s1065_s29 = smov 127  }
  0xd0   : > { %435 = vrot.lane.b32.xlu0 %v1275_v54, %s1063_s14 }
  0xd3   : > { %438 = vrot.lane.b32.xlu1 %v1275_v54, %s1062_s12  ;;  %505 = vrot.lane.b32.xlu2 %v500_v57, %s1062_s12 }
  0xd8   : > { %523 = vrot.lane.b32.xlu0 %v518_v59, %s1063_s14 }
  0xdb   : > { %521 = vrot.lane.b32.xlu2 %v517_v61, %s1063_s14  ;;  %503 = vrot.lane.b32.xlu1 %v499_v60, %s1062_s12  ;;  %s1066_s14 = smov 126   ;;  %s972_s12 = sshra.s32 %s715_s17, 4  ;;  %s973_s12 = int_to_ptr.hbm [resolvable:$true] %s972_s12 }
  0xdc   : > { %s974_s24 = scalar_lea.hbm %s973_s12, 4  ;;  %p979_p9 = scmp.lt.s32.totalorder %s973_s12, %s1377_s6 }
  0xdd   : > { %p975_p5 = scmp.ne.s32.totalorder %s973_s12, %s974_s24  ;;  %p980_p10 = scmp.lt.s32.totalorder %s978_s9, %s974_s24 }
  0xdf   : > { %p976_p6 = pnand %p975_p5, %p1153_p3  ;;  %p981_p11 = por %p980_p10, %p979_p9 }
  0xe1   : > { %p977_p7 = pneg %p976_p6 }
  0xe3   : > { %p982_p12 = pnand %p981_p11, %p977_p7 }
 0x105   : > { %v556_v0 = vpop.permute.xlu2 %555 }
 0x106   : > { %v561_v6 = vadd.f32 %v556_v0, %v539_v2 }
 0x10d   : > { %v574_v4 = vpop.permute.xlu2 %573 }
 0x115   : > { %v637_v16 = vpop.permute.xlu2 %636 }
 0x118   : > { %v615_v1 = vpop.permute.xlu0 %614 }
 0x11d   : > { %v554_v5 = vpop.permute.xlu1 %553  ;;  %v424_v30 = vpop.permute.xlu2 %423 }
 0x11e   : > { %v557_v7 = vsel %vm453_vm10, %v554_v5, %v556_v0 }
 0x11f   : > { %v560_v8 = vadd.f32 %v557_v7, %v538_v3 }
 0x120   : > { %v576_v9 = vpop.permute.xlu0 %575 }
 0x121   : > { %v577_v10 = vsel %vm451_vm9, %v574_v4, %v576_v9  ;;  %v581_v11 = vadd.f32 %v576_v9, %v561_v6 }
 0x122   : > { %v580_v12 = vadd.f32 %v577_v10, %v560_v8 }
 0x123   : > { %586 = vrot.lane.b32.xlu2 %v581_v11, %s1065_s29 }
 0x124   : > { %584 = vrot.lane.b32.xlu1 %v580_v12, %s1065_s29  ;;  %s712_s29 = sshll.u32 %s342_s7, 4  ;;  %s713_s29 = int_to_ptr.vmem [resolvable:$true] %s712_s29 }
 0x125   : > { %v617_v14 = vpop.permute.xlu1 %616  ;;  %v488_v33 = vpop.permute.xlu2 %487 }
 0x126   : > { %v622_v15 = vadd.f32 %v617_v14, %v600_v13  ;;  %v618_v20 = vsel %vm453_vm10, %v615_v1, %v617_v14  ;;  %v490_v45 = vmul.f32 %v488_v33, %v1245_v29 }
 0x127   : > { %v621_v23 = vadd.f32 %v618_v20, %v599_v22 }
 0x128   : > { %v642_v18 = vadd.f32 %v637_v16, %v622_v15 }
 0x12a   : > { %v646_v19 = vpop.permute.xlu0 %645 }
 0x12b   : > { %v649_v21 = vmul.f32 %v646_v19, %v642_v18  ;;  %664 = vperm.xlu2 %957, %v661_v17  }
 0x12d   : > { %654 = vrot.lane.b32.xlu1 %v649_v21, %s1066_s14  ;;  %v635_v24 = vpop.permute.xlu1 %634  ;;  %v506_v38 = vpop.permute.xlu2 %505 }
 0x12e   : > { %v638_v25 = vsel %vm451_vm9, %v635_v24, %v637_v16 }
 0x12f   : > { %v641_v26 = vadd.f32 %v638_v25, %v621_v23 }
 0x131   : > { %v648_v27 = vmul.f32 %v646_v19, %v641_v26 }
 0x132   : > { %v427_v31 = vpop.permute.xlu0 %426 }
 0x133   : > { %652 = vrot.lane.b32.xlu0 %v648_v27, %s1066_s14 }
 0x135   : > { %v421_v28 = vpop.permute.xlu1 %420  ;;  %v522_v46 = vpop.permute.xlu2 %521 }
 0x136   : > { %v442_v36 = vsel %vm441_vm3, %v1275_v54, %v421_v28 }
 0x137   : > { %v444_v37 = vsel %vm443_vm5, %v442_v36, %v424_v30 }
 0x138   : > { %v446_v39 = vsel %vm445_vm6, %v444_v37, %v427_v31 }
 0x13a   : > { %v433_v34 = vpop.permute.xlu0 %432 }
 0x13d   : > { %v430_v32 = vpop.permute.xlu1 %429 }
 0x13e   : > { %v448_v41 = vsel %vm447_vm7, %v446_v39, %v430_v32 }
 0x13f   : > { %v450_v43 = vsel %vm449_vm8, %v448_v41, %v433_v34 }
 0x142   : > { %v436_v40 = vpop.permute.xlu0 %435 }
 0x143   : > { %v452_v47 = vsel %vm451_vm9, %v450_v43, %v436_v40 }
 0x145   : > { %v439_v35 = vpop.permute.xlu1 %438 }
 0x146   : > { %v454_v51 = vsel %vm453_vm10, %v452_v47, %v439_v35 }
 0x147   : > { %v528_v53 = vperm.slane %v454_v51, 0 }
 0x14a   : > { %v524_v48 = vpop.permute.xlu0 %523 }
 0x14b   : > { %v525_v52 = vsel %vm451_vm9, %v522_v46, %v524_v48 }
 0x14d   : > { %v504_v42 = vpop.permute.xlu1 %503 }
 0x14e   : > { %v507_v44 = vsel %vm453_vm10, %v504_v42, %v506_v38 }
 0x14f   : > { %v509_v49 = vadd.f32 %v507_v44, %v490_v45 }
 0x151   : > { %v527_v54 = vadd.f32 %v525_v52, %v509_v49 }
 0x153   : > { %v529_v57 = vmul.f32 %v528_v53, %v527_v54 }
 0x17d   : > { %v587_v55 = vpop.permute.xlu2 %586 }
 0x185   : > { %v665_v63 = vpop.permute.xlu2 %664 }
 0x196   : > { %v585_v50 = vpop.permute.xlu1 %584 }
 0x197   : > { %v589_v56 = vsel %vm588_vm12, %v585_v50, %v587_v55 }
 0x198   : > { %v591_v29 = vadd.f32 %v589_v56, %v529_v57 }
 0x19f   : > { %v655_v58 = vpop.permute.xlu1 %654 }
 0x1a5   : > { %v653_v59 = vpop.permute.xlu0 %652 }
 0x1a6   : > { %v657_v60 = vsel %vm656_vm13, %v653_v59, %v655_v58 }
 0x1a7   : > { %v659_v61 = vadd.f32 %v657_v60, %v591_v29 }
 0x1a9   : > { %862 = vmatpush.msk.msra.mxu0 %vm671_vm14, %v659_v61 }
 0x1aa   : > { %863 = vmatmul.msk.f32.vlgmr.msra.gmra.mxu0 %vm667_vm15, %v660_v62 }
 0x227   : > { %v692_v0 = vpop.f32.mrf.mxu0 }
 0x228   : > { %v693_v1 = vadd.f32 %v692_v0, %v665_v63 }
 0x22a   : > { %v695_v2 = vmax.f32 %v693_v1, 0.0 }
 0x22c   : > { %696 = vst [vmem:[%s342_s7] sm:$0xf] %v695_v2 }
 0x22d   : > { %985 = shalt.err (!%p982_p12)
}
 0x22e   : > { %871 = dma.vmem_to_hbm [thread:$0]  (%p1153_p3), %s713_s29, 64, %s715_s17, %s698_s25  }
 0x22f PF: > { %p877_p13 = scmp.ge.s32.totalorder %s1052_s28, 2  ;;  %s726_s16 = sand.u32 1, %s1024_s21  }
 0x230   : > { %s727_s0 = scalar_lea.sflag [#allocation3], %s726_s16 }
 0x231   : > { %p874_p0 = pnand %p877_p13, %p1162_p8 }
 0x233   : > { %p875_p1 = pneg %p874_p0 }
 0x235   : > { %1019 = dma.done.wait (%p875_p1), %s727_s0, 64  }
 0x236   : > { %1021 = vsyncadd (%p875_p1), %s727_s0, 4294967232  ;;  %s19_s28 = sadd.s32 1, %s1052_s28   ;;  %s1394_s25 = sld [smem:[#allocation5_spill]] }
 0x237   : > { %p16_p2 = scmp.ge.s32.totalorder %s19_s28, 6   ;;  %s1395_s10 = sld [smem:[#allocation6_spill]] }
 0x238   : > { %s1396_s27 = sld [smem:[#allocation7_spill]]  ;;  %s1397_s21 = smov %s1028_s22 }
 0x239   : > { %s1398_s22 = smov %s1032_s23  ;;  %s1399_s23 = smov %s1171_s15 }
 0x23a   : > { %s1400_s24 = smov %s1044_s26  ;;  %18 = sbr.rel (!%p16_p2) target bundleno = 7 (0x7), region = 93 }
 0x23d   : > { %s1401_s26 = smov %s1395_s10 }
 0x23f   :  { %733 = vsyncpa [#allocation3], 1 }
 0x240   :  { %735 = vsyncpa [#allocation3 + $0x1], 1 }

</bundles_post_ra>
